<compile_context>
chip_gen: v7x
topology: tpu7x:2x2x1
jax: 0.10.0
libtpu: 0.0.40
codegen_flags: <defaults>
</compile_context>

<pallas_src>
import functools

import jax
import jax.numpy as jnp
from jax.experimental import pallas as pl
from jax.experimental.pallas import tpu as pltpu


# ----------------------------- fused pool kernel -----------------------------
def _pool_kernel(*refs, inv_win, mode):
    """Reduce the window-pixel axis of one lane-dense (1, kh*kw, N*C) batch block.

    refs = (w_ref, x_ref, o_ref) for mode == 'mix'  (w_ref: (2,) sigmoid'ed weights, SMEM)
         = (x_ref, o_ref)        otherwise
    o_ref: (1, 1, N*C) in token-major / channel-minor order, so the wrapper's
    reshape to (B, N, C) is a free contiguous reshape.
    """
    if mode == "mix":
        w_ref, x_ref, o_ref = refs
    else:
        x_ref, o_ref = refs

    x = x_ref[...]                                                  # (1, KW, NC)
    if mode == "max":
        # Max is exact in the input dtype (bf16 stays bf16 on v6e/v7x VPUs).
        red = jnp.max(x, axis=1, keepdims=True)
    elif mode == "mean":
        red = jnp.sum(x.astype(jnp.float32), axis=1, keepdims=True) * inv_win
    else:  # "mix": sigmoid(w)[0]*avg + sigmoid(w)[1]*max
        w0 = w_ref[0]                                               # hoisted scalar reads
        w1 = w_ref[1]
        mx = jnp.max(x, axis=1, keepdims=True).astype(jnp.float32)
        av = jnp.sum(x.astype(jnp.float32), axis=1, keepdims=True) * inv_win
        red = av * w0 + mx * w1
    o_ref[...] = red.astype(o_ref.dtype)                            # one unmasked lane-dense store


# ----------------------------- wrapper ---------------------------------------
def patch_embedding(x, patch_size, *, embedding_mode="max", mix_weight=None):
    """JAX/Pallas equivalent of PatchEmbedding.forward: pool -> flatten(2) -> transpose(1,2)."""
    b, c, h, w = x.shape
    if patch_size is None:
        # nn.Flatten(2) + transpose(1, 2): pure layout change, nothing to kernelize.
        return jnp.transpose(x.reshape(b, c, h * w), (0, 2, 1))

    ph, pw = (patch_size, patch_size) if isinstance(patch_size, int) else tuple(patch_size)
    # TODO(synk): only the evenly-divisible case of adaptive_{max,avg}_pool2d is implemented
    # (PyTorch's uneven adaptive windows are not reproduced).
    assert h % ph == 0 and w % pw == 0
    kh, kw = h // ph, w // pw
    n_tok = ph * pw
    kwin = kh * kw
    nc = n_tok * c

    # Lane-dense rearrange (one cheap XLA transpose, done once in the wrapper):
    #   (B, C, H, W) -> (B, C, ph, kh, pw, kw) -> (B, kh, kw, ph, pw, C) -> (B, kh*kw, ph*pw*C)
    # so the kernel reduces over the small sublane "window-pixel" axis and both loads
    # and the single store are full-width along the fused (N*C)-wide lane axis.
    x_re = (x.reshape(b, c, ph, kh, pw, kw)
             .transpose(0, 3, 5, 2, 4, 1)
             .reshape(b, kwin, nc))

    kernel = functools.partial(_pool_kernel, inv_win=1.0 / float(kwin), mode=embedding_mode)

    in_specs = [pl.BlockSpec((1, kwin, nc), lambda i: (i, 0, 0))]
    operands = [x_re]
    if embedding_mode == "mix":
        if mix_weight is None:
            mix_weight = jnp.ones((2,), jnp.float32)       # MixPool parameter / buffer init
        w_sig = jax.nn.sigmoid(mix_weight.astype(jnp.float32))
        in_specs = [pl.BlockSpec(memory_space=pltpu.MemorySpace.SMEM)] + in_specs
        operands = [w_sig] + operands

    out = pl.pallas_call(
        kernel,
        grid=(b,),                                          # batch-parallel (2 TCs on v7x)
        in_specs=in_specs,
        out_specs=pl.BlockSpec((1, 1, nc), lambda i: (i, 0, 0)),
        out_shape=jax.ShapeDtypeStruct((b, 1, nc), x.dtype),
        compiler_params=pltpu.CompilerParams(dimension_semantics=("parallel",)),
    )(*operands)
    return out.reshape(b, n_tok, c)                         # free contiguous reshape -> (B, N, C)


# ----------------------------- pure-JAX reference ----------------------------
def _reference(x, patch_size, mode, mix_weight):
    b, c, h, w = x.shape
    if patch_size is None:
        return jnp.transpose(x.reshape(b, c, h * w), (0, 2, 1))
    ph = pw = patch_size
    kh, kw = h // ph, w // pw
    xr = x.reshape(b, c, ph, kh, pw, kw)
    mx = jnp.max(xr, axis=(3, 5))
    av = jnp.mean(xr, axis=(3, 5))
    if mode == "max":
        pooled = mx
    elif mode == "mean":
        pooled = av
    else:
        ws = jax.nn.sigmoid(mix_weight)
        pooled = av * ws[0] + mx * ws[1]
    return jnp.transpose(pooled.reshape(b, c, ph * pw), (0, 2, 1))


if __name__ == "__main__":
    B, C, H, W = 2, 32, 16, 16
    PATCH = 4

    key = jax.random.PRNGKey(0)
    kx, kw_ = jax.random.split(key)
    x = jax.random.normal(kx, (B, C, H, W), jnp.float32)
    mix_w = jax.random.normal(kw_, (2,), jnp.float32)

    # Default PatchEmbedding: embedding_mode='max'; also exercise 'mean', 'mix', and
    # the patch_size=None (pure flatten+transpose) path.
    out_max = patch_embedding(x, PATCH, embedding_mode="max")
    out_mean = patch_embedding(x, PATCH, embedding_mode="mean")
    out_mix = patch_embedding(x, PATCH, embedding_mode="mix", mix_weight=mix_w)
    out_none = patch_embedding(x, None)
    jax.block_until_ready((out_max, out_mean, out_mix, out_none))

    assert out_max.shape == (B, PATCH * PATCH, C)
    assert out_none.shape == (B, H * W, C)
    for got, mode in ((out_max, "max"), (out_mean, "mean"), (out_mix, "mix")):
        want = _reference(x, PATCH, mode, mix_w)
        assert jnp.all(jnp.isfinite(got)), mode
        assert jnp.allclose(got, want, atol=1e-5, rtol=1e-5), mode
    assert jnp.allclose(out_none, _reference(x, None, "max", mix_w))

    print("KERNEL_OK")
</pallas_src>

<mosaic_0001>
module attributes {stable_mosaic.version = 11 : i64} {
  func.func @_pool_kernel(%arg0: i32, %arg1: memref<1x16x512xf32, #tpu.memory_space<vmem>>, %arg2: memref<1x1x512xf32, #tpu.memory_space<vmem>>) attributes {dimension_semantics = [#tpu.dimension_semantics<parallel>], iteration_bounds = array<i64: 2>, scalar_prefetch = 0 : i64, scratch_operands = 0 : i64, tpu.core_type = #tpu.core_type<tc>, window_params = [{transform_indices = @transform_0, window_bounds = array<i64: 1, 16, 512>}, {transform_indices = @transform_1, window_bounds = array<i64: 1, 1, 512>}]} {
    %c0 = arith.constant 0 : index
    %c0_0 = arith.constant 0 : index
    %c0_1 = arith.constant 0 : index
    %0 = vector.load %arg1[%c0, %c0_0, %c0_1] : memref<1x16x512xf32, #tpu.memory_space<vmem>>, vector<1x16x512xf32>
    %cst = arith.constant dense<0xFF800000> : vector<1x512xf32>
    %1 = vector.multi_reduction <maximumf>, %0, %cst [1] : vector<1x16x512xf32> to vector<1x512xf32>
    %2 = vector.shape_cast %1 : vector<1x512xf32> to vector<1x1x512xf32>
    %c0_2 = arith.constant 0 : index
    %c0_3 = arith.constant 0 : index
    %c0_4 = arith.constant 0 : index
    %3 = vector.load %arg2[%c0_2, %c0_3, %c0_4] : memref<1x1x512xf32, #tpu.memory_space<vmem>>, vector<1x1x512xf32>
    tpu.vector_store %arg2[%c0_2, %c0_3, %c0_4], %2 {strides = array<i32>} : memref<1x1x512xf32, #tpu.memory_space<vmem>>, vector<1x1x512xf32>,
    return
  }
  func.func @transform_0(%arg0: i32) -> (i32, i32, i32) {
    %c0_i32 = arith.constant 0 : i32
    %c0_i32_0 = arith.constant 0 : i32
    %c0_i32_1 = arith.constant 0 : i32
    return %arg0, %c0_i32, %c0_i32_0 : i32, i32, i32
  }
  func.func @transform_1(%arg0: i32) -> (i32, i32, i32) {
    %c0_i32 = arith.constant 0 : i32
    %c0_i32_0 = arith.constant 0 : i32
    %c0_i32_1 = arith.constant 0 : i32
    return %arg0, %c0_i32, %c0_i32_0 : i32, i32, i32
  }
}

</mosaic_0001>

<bundles_post_ra>
// kernel: tpu_custom_call.1
= control target key start
LH: loop header
LB: loop body
LE: loop exit
PB: predicated region body
PF: predicated region fallthrough
CT: control target
= control target key end

     0   :  { %6 = vsyncpa [#allocation3], 0  ;;  %s629_s0 = inlined_call_operand.hbm [shape: f32[2,16,512], index: 0, kind: input, shape index: {}]   ;;  %s630_s1 = inlined_call_operand.hbm [shape: f32[2,1,512], index: 1, kind: output, shape index: {}]  }
   0x1   :  { %8 = vsyncpa [#allocation3 + $0x1], 0 }
   0x2   :  { %9 = vsyncpa [#allocation4], 0 }
   0x3   :  { %11 = vsyncpa [#allocation4 + $0x1], 0  ;;  %s468_s6 = smov 0   ;;  %s470_s7 = smov 0  }
   0x4   :  { %s472_s8 = smov 0   ;;  %s474_s9 = smov 0  }
   0x5 LB: > { %s489_s10 = sadd.s32 4294967295, %s451_s9   ;;  %s290_s11 = sadd.s32 4294967294, %s451_s9   ;;  %s451_s9 = sphi %s474_s9, %s643_s9   ;;  %s447_s8 = sphi %s472_s8, %s642_s8   ;;  %s443_s7 = sphi %s470_s7, %s641_s7   ;;  %s439_s6 = sphi %s468_s6, %s640_s6  }
   0x6   : > { %s493_s12 = sadd.s32 1, %s451_s9   ;;  %s24_s13 = sadd.s32 1, %s447_s8 }
   0x7   : > { %s21_s14 = ssub.s32 %s451_s9, %s493_s12  ;;  %p31_p0 = scmp.ne.s32.totalorder %s447_s8, %s443_s7 }
   0x8   : > { %p22_p1 = scmp.eq.s32.totalorder %s21_s14, 0  ;;  %p32_p2 = scmp.eq.s32.totalorder %s451_s9, 0 }
   0x9   : > { %p37_p3 = scmp.ne.s32.totalorder %s443_s7, %s439_s6  ;;  %p38_p4 = scmp.eq.s32.totalorder %s489_s10, 0 }
   0xa   : > { %s505_s15 = scalar_select %p22_p1, %s447_s8, %s24_s13  }
   0xb   : > { %p507_p5 = por %p32_p2, %p31_p0  ;;  %p511_p6 = por %p38_p4, %p37_p3 }
   0xc   : > { %p61_p7 = scmp.eq.s32.totalorder %s489_s10, 1  ;;  %p67_p8 = scmp.eq.s32.totalorder %s290_s11, 1 }
   0xd   : > { %p318_p10 = scmp.lt.s32.totalorder %s451_s9, 2  ;;  %s87_s20 = sand.u32 1, %s447_s8  }
   0xe   : > { %p518_p11 = por %p61_p7, %p31_p0  ;;  %p522_p12 = por %p67_p8, %p37_p3 }
   0xf   : > { %s304_s21 = sshll.u32 %s451_s9, 10  ;;  %s293_s22 = sshll.u32 %s87_s20, 6 }
  0x10   : > { %s634_s18 = scalar_select %p518_p11, 1, 0 }
  0x11   : > { %s635_s19 = scalar_select %p522_p12, 1, 0 }
  0x12   : > { %s531_s25 = scalar_lea.hbm %s629_s0, %s304_s21  ;;  %s91_s26 = scalar_lea.vmem [#allocation2], %s293_s22 }
  0x13   : > { %s98_s27 = sshll.u32 %s91_s26, 4  ;;  %p535_p13 = pnand %p318_p10, %p507_p5  ;;  %s539_s27 = int_to_ptr.vmem [resolvable:$true] %s98_s27 }
  0x14   : > { %s541_s29 = scalar_lea.sflag [#allocation3], %s87_s20  ;;  %s355_s30 = scalar_lea.hbm %s531_s25, 1024 }
  0x15   : > { %p356_p0 = scmp.ne.s32.totalorder %s531_s25, %s355_s30  ;;  %p357_p1 = pneg %p535_p13 }
  0x16   : > { %s360_s4 = scalar_lea.hbm %s629_s0, 2048  ;;  %p361_p4 = scmp.lt.u32.totalorder %s531_s25, %s629_s0 }
  0x17   : > { %p358_p2 = pnand %p357_p1, %p356_p0  ;;  %p362_p5 = scmp.lt.u32.totalorder %s360_s4, %s355_s30 }
  0x18   : > { %p364_p8 = scmp.lt.u32.totalorder %s355_s30, %s531_s25 }
  0x19   : > { %p359_p3 = pneg %p358_p2  ;;  %p363_p7 = por %p362_p5, %p361_p4 }
  0x1b   : > { %p365_p10 = por %p364_p8, %p363_p7 }
  0x1d   : > { %p366_p9 = pnand %p365_p10, %p359_p3 }
  0x1f   : > { %369 = shalt.err (!%p366_p9)
}
  0x20   : > { %s370_s13 = scalar_lea.vmem %s539_s27, 1024  ;;  %s453_s14 = smov [#allocation2]  }
  0x21   : > { %p371_p0 = scmp.ne.s32.totalorder %s539_s27, %s370_s13  ;;  %s375_s16 = sshll.u32 %s453_s14, 4  ;;  %s376_s16 = int_to_ptr.vmem [resolvable:$false] %s375_s16 }
  0x22   : > { %s377_s20 = scalar_lea.vmem %s376_s16, 2048  ;;  %p378_p11 = scmp.lt.s32.totalorder %s539_s27, %s376_s16 }
  0x23   : > { %p373_p2 = pnand %p371_p0, %p357_p1  ;;  %p379_p4 = scmp.lt.s32.totalorder %s377_s20, %s370_s13 }
  0x25   : > { %p374_p12 = pneg %p373_p2  ;;  %p380_p5 = por %p379_p4, %p378_p11 }
  0x27   : > { %p381_p7 = pnand %p380_p5, %p374_p12 }
  0x29   : > { %384 = shalt.err (!%p381_p7)
}
  0x2a   : > { %s454_s21 = smov 512   ;;  %s455_s22 = smov 32  }
  0x2b   : > { %313 = dma.hbm_to_vmem [thread:$0]  (!%p535_p13), %s531_s25, 1024, %s539_s27, %s541_s29, %s454_s21, %s454_s21, %s455_s22  }
  0x2c   : > { %p296_p9 = scmp.ge.s32.totalorder %s451_s9, 1  ;;  %p106_p1 = scmp.lt.s32.totalorder %s451_s9, 3 }
  0x2e   : > { %p107_p3 = pnand %p296_p9, %p106_p1 }
  0x2f   : > { %s572_s23 = sand.u32 (!%p107_p3), 1, %s443_s7  }
  0x30   : > { %110 = sbr.rel (%p107_p3) target bundleno = 95 (0x5f), region = 24  ;;  %s297_s24 = sshll.u32 (!%p107_p3), %s572_s23, 6 }
  0x31   : > { %s113_s26 = scalar_lea.sflag (!%p107_p3), [#allocation3], %s572_s23  ;;  %s116_s30 = scalar_lea.vmem (!%p107_p3), [#allocation2], %s297_s24 }
  0x37   : > { %430 = dma.done.wait (%p511_p6), %s113_s26, 1024  }
  0x38   : > { %432 = vsyncadd (%p511_p6), %s113_s26, 4294966272  ;;  %v135_v0 = vld [vmem:[%s116_s30] sm:$0xff]  ;;  %v136_v1 = vld [vmem:[%s116_s30 + $0x8] sm:$0xff]  ;;  %v456_v18 = vmov 1966171168   ;;  %v180_v20 = vlaneseq  ;;  %s298_s17 = sshll.u32 %s572_s23, 2 }
  0x39   : > { %v137_v2 = vld [vmem:[%s116_s30 + $0x10] sm:$0xff]  ;;  %v138_v3 = vld [vmem:[%s116_s30 + $0x18] sm:$0xff]  ;;  %v139_v4 = vld [vmem:[%s116_s30 + $0x20] sm:$0xff]  ;;  %v178_v19 = vunpack.c.l.s4 %v456_v18  ;;  %s134_s25 = scalar_lea.vmem [#allocation5], %s298_s17  ;;  %s305_s28 = sshll.u32 %s489_s10, 6 }
  0x3a   : > { %v140_v5 = vld [vmem:[%s116_s30 + $0x28] sm:$0xff]  ;;  %v141_v6 = vld [vmem:[%s116_s30 + $0x30] sm:$0xff]  ;;  %v142_v7 = vld [vmem:[%s116_s30 + $0x38] sm:$0xff]  ;;  %v143_v8 = vmax.f32 %v135_v0, %v139_v4  ;;  %v181_v30 = vshrl.u32 %v180_v20, 7  ;;  %s220_s27 = sshll.u32 %s134_s25, 4  ;;  %vm202_vm0 = vcmp.lt.s32.totalorder %v180_v20, 512  ;;  %s587_s3 = scalar_lea.hbm %s630_s1, %s305_s28  ;;  %s582_s27 = int_to_ptr.vmem [resolvable:$true] %s220_s27 }
  0x3b   : > { %v150_v9 = vmax.f32 %v136_v1, %v140_v5  ;;  %v157_v10 = vmax.f32 %v137_v2, %v141_v6  ;;  %v164_v11 = vmax.f32 %v138_v3, %v142_v7  ;;  %v179_v29 = vunpack.c.0.s8 %v178_v19  ;;  %s206_s4 = scalar_lea.sflag [#allocation4], %s572_s23  ;;  %s385_s5 = scalar_lea.vmem %s582_s27, 64 }
  0x3c   : > { %v144_v12 = vrot.slane %v143_v8, 4  ;;  %p386_p6 = scmp.ne.s32.totalorder %s582_s27, %s385_s5  ;;  %p637_p11 = scmp.ne.s32.totalorder %s634_s18, 0 }
  0x3d   : > { %v151_v13 = vrot.slane %v150_v9, 4  ;;  %v158_v14 = vrot.slane %v157_v10, 4  ;;  %v165_v15 = vrot.slane %v164_v11, 4  ;;  %v182_v39 = vsub.s32 %v179_v29, %v181_v30  ;;  %s457_s10 = smov [#allocation5]  }
  0x3e   : > { %v145_v16 = vmax.f32 %v143_v8, %v144_v12  ;;  %p387_p12 = pnand %p386_p6, %p637_p11  ;;  %s389_s11 = sshll.u32 %s457_s10, 4  ;;  %s390_s11 = int_to_ptr.vmem [resolvable:$false] %s389_s11 }
  0x3f   : > { %v152_v17 = vmax.f32 %v150_v9, %v151_v13  ;;  %v159_v21 = vmax.f32 %v157_v10, %v158_v14  ;;  %v166_v22 = vmax.f32 %v164_v11, %v165_v15  ;;  %s391_s13 = scalar_lea.vmem %s390_s11, 128  ;;  %p392_p8 = scmp.lt.s32.totalorder %s582_s27, %s390_s11 }
  0x40   : > { %v146_v23 = vrot.slane %v145_v16, 2  ;;  %p388_p13 = pneg %p387_p12  ;;  %p393_p10 = scmp.lt.s32.totalorder %s391_s13, %s385_s5 }
  0x41   : > { %v153_v24 = vrot.slane %v152_v17, 2  ;;  %v160_v25 = vrot.slane %v159_v21, 2  ;;  %v167_v26 = vrot.slane %v166_v22, 2 }
  0x42   : > { %v147_v27 = vmax.f32 %v145_v16, %v146_v23  ;;  %p394_p0 = por %p393_p10, %p392_p8 }
  0x43   : > { %v154_v28 = vmax.f32 %v152_v17, %v153_v24  ;;  %v161_v31 = vmax.f32 %v159_v21, %v160_v25  ;;  %v168_v32 = vmax.f32 %v166_v22, %v167_v26 }
  0x44   : > { %v148_v33 = vrot.slane %v147_v27, 1  ;;  %p395_p2 = pnand %p394_p0, %p388_p13 }
  0x45   : > { %v155_v34 = vrot.slane %v154_v28, 1  ;;  %v162_v35 = vrot.slane %v161_v31, 1  ;;  %v169_v36 = vrot.slane %v168_v32, 1 }
  0x46   : > { %v149_v37 = vmax.f32 %v147_v27, %v148_v33 }
  0x47   : > { %v156_v38 = vmax.f32 %v154_v28, %v155_v34  ;;  %v163_v40 = vmax.f32 %v161_v31, %v162_v35  ;;  %v170_v41 = vmax.f32 %v168_v32, %v169_v36 }
  0x49   : > { %v175_v42 = vcombine.low %v149_v37, %v156_v38  ;;  %v176_v43 = vcombine.low %v163_v40, %v170_v41 }
  0x4b   : > { %v183_v44 = vrot.slane %v175_v42, %v182_v39  ;;  %v190_v45 = vrot.slane %v176_v43, %v182_v39 }
  0x4d   : > { %v191_v46 = vcombine.low %v183_v44, %v190_v45 }
  0x4f   : > { %v198_v47 = vrot.slane %v191_v46, %v182_v39 }
  0x51   : > { %204 = vst.msk [vmem:[%s134_s25] sm:$0xf] %vm202_vm0, %v198_v47 }
  0x52   : > { %398 = shalt.err (!%p395_p2)
}
  0x53   : > { %s399_s14 = scalar_lea.hbm %s587_s3, 64  ;;  %s403_s21 = scalar_lea.hbm %s630_s1, 128 }
  0x54   : > { %p400_p4 = scmp.ne.s32.totalorder %s587_s3, %s399_s14  ;;  %p404_p9 = scmp.lt.u32.totalorder %s587_s3, %s630_s1 }
  0x55   : > { %p405_p1 = scmp.lt.u32.totalorder %s403_s21, %s399_s14  ;;  %p407_p6 = scmp.lt.u32.totalorder %s399_s14, %s587_s3 }
  0x56   : > { %p401_p5 = pnand %p400_p4, %p637_p11 }
  0x57   : > { %p406_p3 = por %p405_p1, %p404_p9 }
  0x58   : > { %p402_p7 = pneg %p401_p5 }
  0x59   : > { %p408_p12 = por %p407_p6, %p406_p3 }
  0x5b   : > { %p409_p13 = pnand %p408_p12, %p402_p7 }
  0x5d   : > { %412 = shalt.err (!%p409_p13)
}
  0x5e   : > { %308 = dma.vmem_to_hbm [thread:$0]  (%p637_p11), %s582_s27, 64, %s587_s3, %s206_s4  }
  0x5f PF: > { %s232_s24 = sand.u32 1, %s439_s6   ;;  %p638_p8 = scmp.ne.s32.totalorder %s635_s19, 0 }
  0x60   : > { %p639_p10 = scmp.ge.s32.totalorder %s451_s9, 2  ;;  %s233_s26 = scalar_lea.sflag [#allocation4], %s232_s24 }
  0x62   : > { %p315_p0 = pnand %p639_p10, %p638_p8 }
  0x64   : > { %434 = dma.done.wait (!%p315_p0), %s233_s26, 64  }
  0x65   : > { %436 = vsyncadd (!%p315_p0), %s233_s26, 4294967232  ;;  %p14_p2 = scmp.ge.s32.totalorder %s493_s12, 4   ;;  %s640_s6 = smov %s443_s7 }
  0x66   : > { %s641_s7 = smov %s447_s8  ;;  %s642_s8 = smov %s505_s15 }
  0x67   : > { %s643_s9 = smov %s493_s12  ;;  %16 = sbr.rel (!%p14_p2) target bundleno = 5 (0x5), region = 69 }
  0x6e   :  { %238 = vsyncpa [#allocation3], 1 }
  0x6f   :  { %240 = vsyncpa [#allocation3 + $0x1], 1 }
  0x70   :  { %241 = vsyncpa [#allocation4], 1 }
  0x71   :  { %243 = vsyncpa [#allocation4 + $0x1], 1 }

</bundles_post_ra>
